<compile_context>
chip_gen: v5e
topology: v5e:2x2
jax: 0.10.0
libtpu: 0.0.40
codegen_flags: <defaults>
</compile_context>

<pallas_src>
import functools

import jax
import jax.numpy as jnp
from jax import lax
from jax.experimental import pallas as pl
from jax.experimental.pallas import tpu as pltpu

_LANE = 128
_SUBLANE = 8


def _dice_kernel(pred_ref, true_ref, inter_ref, sum_ref, *,
                 tr, rows, ng_inner, needs_mask):
    # grid = (core_split, reduction_steps); reduction axis is axis 1.
    i = pl.program_id(1)

    @pl.when(i == 0)
    def _():
        inter_ref[...] = jnp.zeros_like(inter_ref)
        sum_ref[...] = jnp.zeros_like(sum_ref)

    p = pred_ref[...].astype(jnp.float32)
    t = true_ref[...].astype(jnp.float32)

    if needs_mask:
        # Only compiled in when the grid over-covers `rows` (ragged tail
        # and/or clamped duplicate block).  Select (not multiply) so any
        # garbage in an out-of-bounds tail block cannot produce NaN/Inf.
        gidx = pl.program_id(0) * ng_inner + i
        row_ids = gidx * tr + lax.broadcasted_iota(jnp.int32, (tr, _LANE), 0)
        valid = row_ids < rows
        zero = jnp.zeros((), jnp.float32)
        p = jnp.where(valid, p, zero)
        t = jnp.where(valid, t, zero)

    # Fold the (tr, 128) tile into the resident (1, 8, 128) output blocks with
    # pure elementwise adds (no per-step cross-lane reduce, no SMEM RMW).
    groups = tr // _SUBLANE
    inter_ref[0] += jnp.sum((p * t).reshape(groups, _SUBLANE, _LANE), axis=0)
    sum_ref[0] += jnp.sum((p + t).reshape(groups, _SUBLANE, _LANE), axis=0)


def dice_coefficient(y_pred, y_true, smooth: float = 1.0):
    """Scalar f32 dice coefficient, matching the PyTorch module's forward."""
    assert y_pred.shape == y_true.shape, "shapes must match for elementwise product"

    # Flatten (PyTorch .view(-1)); keep the original dtype (no f32 copy here).
    p = jnp.reshape(y_pred, (-1,))
    t = jnp.reshape(y_true, (-1,))
    n = p.shape[0]

    # Align total size to (8 * 128) so we can present a (rows, 128) slab with
    # rows % 8 == 0.  Zero padding does not perturb any of the sums.
    align = _LANE * _SUBLANE
    n_pad = ((n + align - 1) // align) * align
    if n_pad != n:
        # TODO(synk): a fully pad-free path would keep the input 1-D in HBM
        # (memory_space=pl.ANY) and mask against n in-kernel; this pad only
        # triggers for sizes that are not already a multiple of 1024.
        p = jnp.pad(p, (0, n_pad - n))
        t = jnp.pad(t, (0, n_pad - n))

    rows = n_pad // _LANE          # multiple of 8
    p2 = p.reshape(rows, _LANE)
    t2 = t.reshape(rows, _LANE)

    # Row tile: target ~2 MiB per input block.  Double-buffered, 2 inputs
    # => ~8 MiB of block buffers, within v5e's 16 MiB default scoped VMEM.
    itemsize = max(jnp.dtype(p2.dtype).itemsize, jnp.dtype(t2.dtype).itemsize)
    target_block_bytes = 2 * 1024 * 1024
    tr_cap = max(_SUBLANE,
                 (target_block_bytes // (_LANE * itemsize)) // _SUBLANE * _SUBLANE)
    tr = min(tr_cap, rows)

    nb = pl.cdiv(rows, tr)                   # total row-blocks
    n_split = 2 if nb >= 2 else 1            # 2-way split -> both v7x TCs
    ng_inner = pl.cdiv(nb, n_split)          # reduction steps per split
    needs_mask = (n_split * ng_inner * tr) != rows

    def in_map(c, i):
        # Clamp so a (possibly) extra trailing block re-reads the last real
        # block; its contribution is zeroed by the in-kernel mask.
        return (jnp.minimum(c * ng_inner + i, nb - 1), 0)

    kernel = functools.partial(_dice_kernel, tr=tr, rows=rows,
                               ng_inner=ng_inner, needs_mask=needs_mask)

    inter_out, sum_out = pl.pallas_call(
        kernel,
        out_shape=(
            jax.ShapeDtypeStruct((n_split, _SUBLANE, _LANE), jnp.float32),
            jax.ShapeDtypeStruct((n_split, _SUBLANE, _LANE), jnp.float32),
        ),
        grid_spec=pltpu.PrefetchScalarGridSpec(
            num_scalar_prefetch=0,
            grid=(n_split, ng_inner),
            in_specs=[
                pl.BlockSpec((tr, _LANE), in_map),
                pl.BlockSpec((tr, _LANE), in_map),
            ],
            out_specs=(
                pl.BlockSpec((1, _SUBLANE, _LANE), lambda c, i: (c, 0, 0)),
                pl.BlockSpec((1, _SUBLANE, _LANE), lambda c, i: (c, 0, 0)),
            ),
        ),
        compiler_params=pltpu.CompilerParams(
            dimension_semantics=("parallel", "arbitrary"),
        ),
    )(p2, t2)

    # Tiny final combine in the wrapper (512 floats per output).
    intersection = jnp.sum(inter_out)
    total = jnp.sum(sum_out)
    return (2.0 * intersection + smooth) / (total + smooth)


def _reference(y_pred, y_true, smooth=1.0):
    pf = y_pred.reshape(-1).astype(jnp.float32)
    tf = y_true.reshape(-1).astype(jnp.float32)
    return (2.0 * jnp.sum(pf * tf) + smooth) / (jnp.sum(pf) + jnp.sum(tf) + smooth)


if __name__ == "__main__":
    key = jax.random.PRNGKey(0)
    k1, k2, k3, k4 = jax.random.split(key, 4)

    # 1) Segmentation-style aligned input: (batch=2, channels=4, H=16, W=16)
    y_pred = jax.nn.sigmoid(jax.random.normal(k1, (2, 4, 16, 16), dtype=jnp.float32))
    y_true = (jax.random.uniform(k2, (2, 4, 16, 16)) > 0.5).astype(jnp.float32)
    dice = jax.block_until_ready(dice_coefficient(y_pred, y_true, smooth=1.0))
    ref = _reference(y_pred, y_true, smooth=1.0)
    assert jnp.allclose(dice, ref, rtol=1e-5, atol=1e-6), (dice, ref)

    # 2) Non-aligned size exercising the pad path: (3, 5, 7, 11)
    yp2 = jax.nn.sigmoid(jax.random.normal(k3, (3, 5, 7, 11), dtype=jnp.float32))
    yt2 = (jax.random.uniform(k4, (3, 5, 7, 11)) > 0.5).astype(jnp.float32)
    dice2 = jax.block_until_ready(dice_coefficient(yp2, yt2, smooth=1.0))
    ref2 = _reference(yp2, yt2, smooth=1.0)
    assert jnp.allclose(dice2, ref2, rtol=1e-5, atol=1e-6), (dice2, ref2)

    # 3) Larger ragged size exercising the 2-way split + clamped-block mask.
    yp3 = jax.nn.sigmoid(jax.random.normal(k1, (600_000,), dtype=jnp.float32))
    yt3 = (jax.random.uniform(k2, (600_000,)) > 0.5).astype(jnp.float32)
    dice3 = jax.block_until_ready(dice_coefficient(yp3, yt3, smooth=1.0))
    ref3 = _reference(yp3, yt3, smooth=1.0)
    assert jnp.allclose(dice3, ref3, rtol=1e-5, atol=1e-5), (dice3, ref3)

    print("KERNEL_OK")
</pallas_src>

<mosaic_0001>
module attributes {stable_mosaic.version = 11 : i64} {
  func.func @_dice_kernel(%arg0: i32, %arg1: i32, %arg2: memref<16x128xf32, #tpu.memory_space<vmem>>, %arg3: memref<16x128xf32, #tpu.memory_space<vmem>>, %arg4: memref<1x8x128xf32, #tpu.memory_space<vmem>>, %arg5: memref<1x8x128xf32, #tpu.memory_space<vmem>>) attributes {dimension_semantics = [#tpu.dimension_semantics<parallel>, #tpu.dimension_semantics<arbitrary>], iteration_bounds = array<i64: 1, 1>, scalar_prefetch = 0 : i64, scratch_operands = 0 : i64, tpu.core_type = #tpu.core_type<tc>, window_params = [{transform_indices = @transform_0, window_bounds = array<i64: 16, 128>}, {transform_indices = @transform_1, window_bounds = array<i64: 16, 128>}, {transform_indices = @transform_2, window_bounds = array<i64: 1, 8, 128>}, {transform_indices = @transform_3, window_bounds = array<i64: 1, 8, 128>}]} {
    %c0_i32 = arith.constant 0 : i32
    %0 = arith.cmpi eq, %arg1, %c0_i32 : i32
    %1 = arith.extui %0 : i1 to i32
    %c0_i32_0 = arith.constant 0 : i32
    %2 = arith.cmpi ne, %1, %c0_i32_0 : i32
    scf.if %2 {
      %cst_17 = arith.constant 0.000000e+00 : f32
      %23 = vector.broadcast %cst_17 : f32 to vector<1x8x128xf32>
      %c0_18 = arith.constant 0 : index
      %c0_19 = arith.constant 0 : index
      %c0_20 = arith.constant 0 : index
      %24 = vector.load %arg4[%c0_18, %c0_19, %c0_20] : memref<1x8x128xf32, #tpu.memory_space<vmem>>, vector<1x8x128xf32>
      tpu.vector_store %arg4[%c0_18, %c0_19, %c0_20], %23 {strides = array<i32>} : memref<1x8x128xf32, #tpu.memory_space<vmem>>, vector<1x8x128xf32>,
      %cst_21 = arith.constant 0.000000e+00 : f32
      %25 = vector.broadcast %cst_21 : f32 to vector<1x8x128xf32>
      %c0_22 = arith.constant 0 : index
      %c0_23 = arith.constant 0 : index
      %c0_24 = arith.constant 0 : index
      %26 = vector.load %arg5[%c0_22, %c0_23, %c0_24] : memref<1x8x128xf32, #tpu.memory_space<vmem>>, vector<1x8x128xf32>
      tpu.vector_store %arg5[%c0_22, %c0_23, %c0_24], %25 {strides = array<i32>} : memref<1x8x128xf32, #tpu.memory_space<vmem>>, vector<1x8x128xf32>,
    } else {
    }
    %c0 = arith.constant 0 : index
    %c0_1 = arith.constant 0 : index
    %3 = vector.load %arg2[%c0, %c0_1] : memref<16x128xf32, #tpu.memory_space<vmem>>, vector<16x128xf32>
    %c0_2 = arith.constant 0 : index
    %c0_3 = arith.constant 0 : index
    %4 = vector.load %arg3[%c0_2, %c0_3] : memref<16x128xf32, #tpu.memory_space<vmem>>, vector<16x128xf32>
    %c0_4 = arith.constant 0 : index
    %c0_5 = arith.constant 0 : index
    %c0_6 = arith.constant 0 : index
    %5 = vector.load %arg4[%c0_4, %c0_5, %c0_6] : memref<1x8x128xf32, #tpu.memory_space<vmem>>, vector<1x8x128xf32>
    %6 = vector.shape_cast %5 : vector<1x8x128xf32> to vector<8x128xf32>
    %7 = arith.mulf %3, %4 : vector<16x128xf32>
    %8 = vector.shape_cast %7 : vector<16x128xf32> to vector<2x8x128xf32>
    %cst = arith.constant dense<0.000000e+00> : vector<8x128xf32>
    %9 = vector.multi_reduction <add>, %8, %cst [0] : vector<2x8x128xf32> to vector<8x128xf32>
    %10 = arith.addf %6, %9 : vector<8x128xf32>
    %c0_7 = arith.constant 0 : index
    %c0_8 = arith.constant 0 : index
    %c0_9 = arith.constant 0 : index
    %11 = vector.load %arg4[%c0_7, %c0_8, %c0_9] : memref<1x8x128xf32, #tpu.memory_space<vmem>>, vector<1x8x128xf32>
    %12 = vector.shape_cast %11 : vector<1x8x128xf32> to vector<8x128xf32>
    %13 = vector.shape_cast %10 : vector<8x128xf32> to vector<1x8x128xf32>
    tpu.vector_store %arg4[%c0_7, %c0_8, %c0_9], %13 {strides = array<i32>} : memref<1x8x128xf32, #tpu.memory_space<vmem>>, vector<1x8x128xf32>,
    %c0_10 = arith.constant 0 : index
    %c0_11 = arith.constant 0 : index
    %c0_12 = arith.constant 0 : index
    %14 = vector.load %arg5[%c0_10, %c0_11, %c0_12] : memref<1x8x128xf32, #tpu.memory_space<vmem>>, vector<1x8x128xf32>
    %15 = vector.shape_cast %14 : vector<1x8x128xf32> to vector<8x128xf32>
    %16 = arith.addf %3, %4 : vector<16x128xf32>
    %17 = vector.shape_cast %16 : vector<16x128xf32> to vector<2x8x128xf32>
    %cst_13 = arith.constant dense<0.000000e+00> : vector<8x128xf32>
    %18 = vector.multi_reduction <add>, %17, %cst_13 [0] : vector<2x8x128xf32> to vector<8x128xf32>
    %19 = arith.addf %15, %18 : vector<8x128xf32>
    %c0_14 = arith.constant 0 : index
    %c0_15 = arith.constant 0 : index
    %c0_16 = arith.constant 0 : index
    %20 = vector.load %arg5[%c0_14, %c0_15, %c0_16] : memref<1x8x128xf32, #tpu.memory_space<vmem>>, vector<1x8x128xf32>
    %21 = vector.shape_cast %20 : vector<1x8x128xf32> to vector<8x128xf32>
    %22 = vector.shape_cast %19 : vector<8x128xf32> to vector<1x8x128xf32>
    tpu.vector_store %arg5[%c0_14, %c0_15, %c0_16], %22 {strides = array<i32>} : memref<1x8x128xf32, #tpu.memory_space<vmem>>, vector<1x8x128xf32>,
    return
  }
  func.func @transform_0(%arg0: i32, %arg1: i32) -> (i32, i32) {
    %c1_i32 = arith.constant 1 : i32
    %0 = arith.muli %arg0, %c1_i32 : i32
    %1 = arith.addi %0, %arg1 : i32
    %c0_i32 = arith.constant 0 : i32
    %2 = arith.minsi %1, %c0_i32 : i32
    %c0_i32_0 = arith.constant 0 : i32
    %c0_i32_1 = arith.constant 0 : i32
    return %2, %c0_i32_0 : i32, i32
  }
  func.func @transform_1(%arg0: i32, %arg1: i32) -> (i32, i32) {
    %c1_i32 = arith.constant 1 : i32
    %0 = arith.muli %arg0, %c1_i32 : i32
    %1 = arith.addi %0, %arg1 : i32
    %c0_i32 = arith.constant 0 : i32
    %2 = arith.minsi %1, %c0_i32 : i32
    %c0_i32_0 = arith.constant 0 : i32
    %c0_i32_1 = arith.constant 0 : i32
    return %2, %c0_i32_0 : i32, i32
  }
  func.func @transform_2(%arg0: i32, %arg1: i32) -> (i32, i32, i32) {
    %c0_i32 = arith.constant 0 : i32
    %c0_i32_0 = arith.constant 0 : i32
    %c0_i32_1 = arith.constant 0 : i32
    return %arg0, %c0_i32, %c0_i32_0 : i32, i32, i32
  }
  func.func @transform_3(%arg0: i32, %arg1: i32) -> (i32, i32, i32) {
    %c0_i32 = arith.constant 0 : i32
    %c0_i32_0 = arith.constant 0 : i32
    %c0_i32_1 = arith.constant 0 : i32
    return %arg0, %c0_i32, %c0_i32_0 : i32, i32, i32
  }
}

</mosaic_0001>

<bundles_post_ra>
// kernel: tpu_custom_call.1
= control target key start
LH: loop header
LB: loop body
LE: loop exit
PB: predicated region body
PF: predicated region fallthrough
CT: control target
= control target key end

     0   :  { %9 = vsyncpa [#allocation3], 0  ;;  %s276_s0 = inlined_call_operand.hbm [shape: f32[16,128], index: 0, kind: input, shape index: {}]   ;;  %s277_s1 = inlined_call_operand.hbm [shape: f32[16,128], index: 1, kind: input, shape index: {}]   ;;  %s278_s2 = inlined_call_operand.hbm [shape: f32[1,8,128], index: 2, kind: output, shape index: {0}]   ;;  %s279_s3 = inlined_call_operand.hbm [shape: f32[1,8,128], index: 3, kind: output, shape index: {1}]  }
   0x1   :  { %10 = vsyncpa [#allocation6], 0 }
   0x2   :  { %11 = vsyncpa [#allocation4], 0 }
   0x3   :  { %12 = vsyncpa [#allocation9], 0  ;;  %s23_s14 = sshll.u32 %s276_s0, 4  ;;  %s238_s15 = smov [#allocation2]   ;;  %s24_s14 = int_to_ptr.hbm [resolvable:$true] %s23_s14 }
   0x4   :  { %s25_s16 = sshll.u32 %s238_s15, 4  ;;  %s42_s19 = sshll.u32 %s277_s1, 4  ;;  %s26_s16 = int_to_ptr.vmem [resolvable:$true] %s25_s16  ;;  %s43_s19 = int_to_ptr.hbm [resolvable:$true] %s42_s19 }
   0x5   :  { %s239_s20 = smov 128   ;;  %s240_s21 = smov 8  }
   0x6   :  { %31 = dma.hbm_to_vmem [thread:$0]  %s24_s14, 256, %s26_s16, [#allocation3], %s239_s20, %s239_s20, %s240_s21  }
   0x7   :  { %s241_s22 = smov [#allocation5]  }
   0x8   :  { %s44_s23 = sshll.u32 %s241_s22, 4  ;;  %s45_s23 = int_to_ptr.vmem [resolvable:$true] %s44_s23 }
   0x9   :  { %50 = dma.hbm_to_vmem [thread:$0]  %s43_s19, 256, %s45_s23, [#allocation6], %s239_s20, %s239_s20, %s240_s21  }
   0xa   :  { %230 = dma.done.wait [#allocation3], 256  }
   0xb   :  { %231 = vsyncadd [#allocation3], 4294967040 }
   0xc   :  { %232 = dma.done.wait [#allocation6], 256  }
   0xd   :  { %233 = vsyncadd [#allocation6], 4294967040  ;;  %v73_v0 = vld [vmem:[#allocation2] sm:$0xff]  ;;  %v74_v1 = vld [vmem:[#allocation2 + $0x8] sm:$0xff]  ;;  %s242_s0 = smov [#allocation7]   ;;  %s96_s26 = sshll.u32 %s278_s2, 4  ;;  %s97_s26 = int_to_ptr.hbm [resolvable:$true] %s96_s26 }
   0xe   :  { %v75_v2 = vld [vmem:[#allocation5] sm:$0xff]  ;;  %v76_v3 = vld [vmem:[#allocation5 + $0x8] sm:$0xff]  ;;  %s94_s1 = sshll.u32 %s242_s0, 4  ;;  %s243_s27 = smov [#allocation8]   ;;  %s95_s1 = int_to_ptr.vmem [resolvable:$true] %s94_s1 }
   0xf   :  { %v78_v4 = vmul.f32 %v75_v2, %v73_v0  ;;  %v84_v5 = vadd.f32 %v75_v2, %v73_v0  ;;  %v79_v6 = vmul.f32 %v76_v3, %v74_v1  ;;  %v85_v7 = vadd.f32 %v76_v3, %v74_v1  ;;  %s105_s28 = sshll.u32 %s243_s27, 4  ;;  %s107_s4 = sshll.u32 %s279_s3, 4  ;;  %s106_s28 = int_to_ptr.vmem [resolvable:$true] %s105_s28  ;;  %s108_s4 = int_to_ptr.hbm [resolvable:$true] %s107_s4 }
  0x11   :  { %v80_v8 = vadd.f32 %v79_v6, %v78_v4  ;;  %v86_v9 = vadd.f32 %v85_v7, %v84_v5 }
  0x13   :  { %82 = vst [vmem:[#allocation7] sm:$0xff] %v80_v8 }
  0x14   :  { %88 = vst [vmem:[#allocation8] sm:$0xff] %v86_v9  ;;  %99 = dma.vmem_to_hbm [thread:$0]  %s95_s1, 128, %s97_s26, [#allocation4]  }
  0x15   :  { %110 = dma.vmem_to_hbm [thread:$0]  %s106_s28, 128, %s108_s4, [#allocation9]  }
  0x16   :  { %234 = dma.done.wait [#allocation4], 128  }
  0x17   :  { %235 = vsyncadd [#allocation4], 4294967168 }
  0x18   :  { %236 = dma.done.wait [#allocation9], 128  }
  0x19   :  { %237 = vsyncadd [#allocation9], 4294967168 }
  0x1a   :  { %119 = vsyncpa [#allocation3], 1 }
  0x1b   :  { %120 = vsyncpa [#allocation6], 1 }
  0x1c   :  { %121 = vsyncpa [#allocation4], 1 }
  0x1d   :  { %122 = vsyncpa [#allocation9], 1 }

</bundles_post_ra>
